<compile_context>
chip_gen: v7x
topology: tpu7x:2x2x1
jax: 0.10.0
libtpu: 0.0.40
codegen_flags: <defaults>
</compile_context>

<pallas_src>
import functools

import jax
import jax.numpy as jnp
from jax import lax
from jax.experimental import pallas as pl
from jax.experimental.pallas import tpu as pltpu

_NEG_BIG = -1e30  # "minus infinity" that stays finite under 0 * x


def _round_up(x: int, m: int) -> int:
    return (x + m - 1) // m * m


def _contrastive_kernel(x_ref, y_ref, out_ref,
                        col_m, col_s, col_t, acc_ref,
                        *, b_real: int, tb: int, tau: float, padded: bool):
    i = pl.program_id(0)
    n_blk = pl.num_programs(0)

    @pl.when(i == 0)
    def _init():
        col_m[...] = jnp.full_like(col_m, _NEG_BIG)
        col_s[...] = jnp.zeros_like(col_s)
        col_t[...] = jnp.zeros_like(col_t)
        acc_ref[0] = jnp.float32(0.0)

    # Row tile of this block, sliced from the resident full arrays.
    row0 = pl.multiple_of(i * tb, tb)
    xr = x_ref[pl.ds(row0, tb), :]
    yr = y_ref[pl.ds(row0, tb), :]
    x_full = x_ref[...]
    y_full = y_ref[...]

    # MXU: contract feature dim (dim 1) of both operands directly; f32 acc.
    dn = (((1,), (1,)), ((), ()))
    logits = lax.dot_general(xr, y_full, dn,
                             preferred_element_type=jnp.float32) * (1.0 / tau)
    x_sim = lax.dot_general(yr, y_full, dn, preferred_element_type=jnp.float32)
    y_sim = lax.dot_general(xr, x_full, dn, preferred_element_type=jnp.float32)

    t = (x_sim + y_sim) * (0.5 * tau)

    if padded:  # trace-time: only emit masks when padding exists.
        tb_rows, bp = logits.shape
        col_ids = lax.broadcasted_iota(jnp.int32, (tb_rows, bp), 1)
        row_ids = lax.broadcasted_iota(jnp.int32, (tb_rows, bp), 0) + i * tb
        col_valid = col_ids < b_real
        row_valid = row_ids < b_real
        logits = jnp.where(jnp.logical_and(row_valid, col_valid),
                           logits, _NEG_BIG)
        t = jnp.where(col_valid, t, _NEG_BIG)

    # targets = softmax((X_sim + Y_sim)/2 * tau) over (real) columns.
    t_max = jnp.max(t, axis=-1, keepdims=True)
    t_exp = jnp.exp(t - t_max)
    targets = t_exp / jnp.sum(t_exp, axis=-1, keepdims=True)
    if padded:
        targets = jnp.where(row_valid, targets, 0.0)  # padded rows: zero mass

    # Row logsumexp of logits (local to this row block).
    r_max = jnp.max(logits, axis=-1, keepdims=True)
    r_lse = r_max + jnp.log(jnp.sum(jnp.exp(logits - r_max), axis=-1,
                                    keepdims=True))

    # Per-block scalar contribution: sum_ij targets * (rowLSE - 2*logits).
    acc_ref[0] += jnp.sum(targets * (r_lse - 2.0 * logits))

    # Per-column target mass; the colLSE term factors as colLSE[j]*col_t[j].
    col_t[...] += jnp.sum(targets, axis=0, keepdims=True)

    # Online column logsumexp of logits across row blocks.
    blk_max = jnp.max(logits, axis=0, keepdims=True)
    new_m = jnp.maximum(col_m[...], blk_max)
    col_s[...] = (col_s[...] * jnp.exp(col_m[...] - new_m)
                  + jnp.sum(jnp.exp(logits - new_m), axis=0, keepdims=True))
    col_m[...] = new_m

    @pl.when(i == n_blk - 1)
    def _finalize():
        col_lse = col_m[...] + jnp.log(col_s[...])
        total = acc_ref[0] + jnp.sum(col_lse * col_t[...])
        out_ref[0, 0] = total * (1.0 / (2.0 * b_real))


def contrastive_loss(X, Y, tau: float = 1.0, *, block_rows=None):
    """Pallas TPU implementation of Contrastive_Loss.forward(X, Y)."""
    assert X.shape == Y.shape and X.ndim == 2
    B, D = X.shape

    if block_rows is None:
        tb = min(128, _round_up(B, 8))
    else:
        assert block_rows % 8 == 0
        tb = block_rows
    b_pad = _round_up(B, tb)
    d_pad = _round_up(D, 128)
    if (b_pad, d_pad) != (B, D):
        pad = ((0, b_pad - B), (0, d_pad - D))
        X = jnp.pad(X, pad)   # zero-padded features don't change the dots;
        Y = jnp.pad(Y, pad)   # padded rows/cols are masked in-kernel.

    grid = (b_pad // tb,)
    full_spec = pl.BlockSpec((b_pad, d_pad), lambda i: (0, 0))

    kernel = functools.partial(_contrastive_kernel, b_real=B, tb=tb,
                               tau=float(tau), padded=(b_pad != B))
    out = pl.pallas_call(
        kernel,
        out_shape=jax.ShapeDtypeStruct((1, 1), jnp.float32),
        grid_spec=pltpu.PrefetchScalarGridSpec(
            num_scalar_prefetch=0,
            grid=grid,
            in_specs=[full_spec, full_spec],
            out_specs=pl.BlockSpec((1, 1), lambda i: (0, 0),
                                   memory_space=pltpu.MemorySpace.SMEM),
            scratch_shapes=[
                pltpu.VMEM((1, b_pad), jnp.float32),   # col_m (running max)
                pltpu.VMEM((1, b_pad), jnp.float32),   # col_s (running sumexp)
                pltpu.VMEM((1, b_pad), jnp.float32),   # col_t (target mass)
                pltpu.SMEM((1,), jnp.float32),         # scalar loss acc
            ]),
        compiler_params=pltpu.CompilerParams(
            # Accumulators are carried across row blocks -> sequential axis.
            dimension_semantics=("arbitrary",)),
    )(X, Y)
    return out[0, 0]


def _reference_loss(X, Y, tau: float = 1.0):
    """Plain-JAX reference mirroring the PyTorch module."""
    X = X.astype(jnp.float32)
    Y = Y.astype(jnp.float32)
    logits = X @ Y.T / tau
    x_sim = Y @ Y.T
    y_sim = X @ X.T
    targets = jax.nn.softmax((x_sim + y_sim) / 2 * tau, axis=-1)
    x_loss = jnp.sum(-targets * jax.nn.log_softmax(logits, axis=-1), axis=1)
    y_loss = jnp.sum(-targets.T * jax.nn.log_softmax(logits.T, axis=-1), axis=1)
    return jnp.mean((x_loss + y_loss) / 2.0)


if __name__ == "__main__":
    key = jax.random.PRNGKey(0)
    kx, ky = jax.random.split(key)
    tau = 0.5

    # Case 1: the nominal small demo shapes (aligned rows, padded lanes).
    B, D = 8, 32
    X = jax.random.normal(kx, (B, D), dtype=jnp.float32)
    Y = jax.random.normal(ky, (B, D), dtype=jnp.float32)
    out = jax.block_until_ready(contrastive_loss(X, Y, tau))
    ref = _reference_loss(X, Y, tau)
    assert jnp.allclose(out, ref, rtol=1e-4, atol=1e-4), (out, ref)

    # Case 2: ragged shapes exercising the pad + mask path.
    B2, D2 = 10, 40
    X2 = jax.random.normal(kx, (B2, D2), dtype=jnp.float32)
    Y2 = jax.random.normal(ky, (B2, D2), dtype=jnp.float32)
    out2 = jax.block_until_ready(contrastive_loss(X2, Y2, tau))
    ref2 = _reference_loss(X2, Y2, tau)
    assert jnp.allclose(out2, ref2, rtol=1e-4, atol=1e-4), (out2, ref2)

    # Case 3: multi-block grid (online column-LSE across row blocks).
    B3, D3 = 24, 32
    X3 = jax.random.normal(kx, (B3, D3), dtype=jnp.float32)
    Y3 = jax.random.normal(ky, (B3, D3), dtype=jnp.float32)
    out3 = jax.block_until_ready(contrastive_loss(X3, Y3, tau, block_rows=8))
    ref3 = _reference_loss(X3, Y3, tau)
    assert jnp.allclose(out3, ref3, rtol=1e-4, atol=1e-4), (out3, ref3)

    print("KERNEL_OK")
</pallas_src>

<mosaic_0001>
module attributes {stable_mosaic.version = 11 : i64} {
  func.func @_contrastive_kernel(%arg0: i32, %arg1: memref<8x128xf32, #tpu.memory_space<vmem>>, %arg2: memref<8x128xf32, #tpu.memory_space<vmem>>, %arg3: memref<1x1xf32, #tpu.memory_space<smem>>, %arg4: memref<1x8xf32, #tpu.memory_space<vmem>>, %arg5: memref<1x8xf32, #tpu.memory_space<vmem>>, %arg6: memref<1x8xf32, #tpu.memory_space<vmem>>, %arg7: memref<1xf32, #tpu.memory_space<smem>>) attributes {dimension_semantics = [#tpu.dimension_semantics<arbitrary>], iteration_bounds = array<i64: 1>, scalar_prefetch = 0 : i64, scratch_operands = 4 : i64, tpu.core_type = #tpu.core_type<tc>, window_params = [{pipeline_mode = #tpu.pipeline_mode<synchronous>, transform_indices = @transform_0, window_bounds = array<i64: 8, 128>}, {pipeline_mode = #tpu.pipeline_mode<synchronous>, transform_indices = @transform_1, window_bounds = array<i64: 8, 128>}, {transform_indices = @transform_2, window_bounds = array<i64: 1, 1>}]} {
    %c0_i32 = arith.constant 0 : i32
    %0 = arith.cmpi eq, %arg0, %c0_i32 : i32
    %1 = arith.extui %0 : i1 to i32
    %c0_i32_0 = arith.constant 0 : i32
    %2 = arith.cmpi ne, %1, %c0_i32_0 : i32
    scf.if %2 {
      %cst_37 = arith.constant -1.000000e+30 : f32
      %74 = vector.broadcast %cst_37 : f32 to vector<1x8xf32>
      %c0_38 = arith.constant 0 : index
      %c0_39 = arith.constant 0 : index
      %75 = vector.load %arg4[%c0_38, %c0_39] : memref<1x8xf32, #tpu.memory_space<vmem>>, vector<1x8xf32>
      tpu.vector_store %arg4[%c0_38, %c0_39], %74 {strides = array<i32>} : memref<1x8xf32, #tpu.memory_space<vmem>>, vector<1x8xf32>,
      %cst_40 = arith.constant 0.000000e+00 : f32
      %76 = vector.broadcast %cst_40 : f32 to vector<1x8xf32>
      %c0_41 = arith.constant 0 : index
      %c0_42 = arith.constant 0 : index
      %77 = vector.load %arg5[%c0_41, %c0_42] : memref<1x8xf32, #tpu.memory_space<vmem>>, vector<1x8xf32>
      tpu.vector_store %arg5[%c0_41, %c0_42], %76 {strides = array<i32>} : memref<1x8xf32, #tpu.memory_space<vmem>>, vector<1x8xf32>,
      %cst_43 = arith.constant 0.000000e+00 : f32
      %78 = vector.broadcast %cst_43 : f32 to vector<1x8xf32>
      %c0_44 = arith.constant 0 : index
      %c0_45 = arith.constant 0 : index
      %79 = vector.load %arg6[%c0_44, %c0_45] : memref<1x8xf32, #tpu.memory_space<vmem>>, vector<1x8xf32>
      tpu.vector_store %arg6[%c0_44, %c0_45], %78 {strides = array<i32>} : memref<1x8xf32, #tpu.memory_space<vmem>>, vector<1x8xf32>,
      %cst_46 = arith.constant 0.000000e+00 : f32
      %c0_47 = arith.constant 0 : index
      %80 = memref.load %arg7[%c0_47] : memref<1xf32, #tpu.memory_space<smem>>
      memref.store %cst_46, %arg7[%c0_47] : memref<1xf32, #tpu.memory_space<smem>>
    } else {
    }
    %c8_i32 = arith.constant 8 : i32
    %3 = arith.muli %arg0, %c8_i32 : i32
    %4 = tpu.assume_multiple %3, 8 : i32
    %5 = arith.index_cast %4 : i32 to index
    %c0 = arith.constant 0 : index
    %6 = vector.load %arg1[%5, %c0] : memref<8x128xf32, #tpu.memory_space<vmem>>, vector<8x128xf32>
    %7 = arith.index_cast %4 : i32 to index
    %c0_1 = arith.constant 0 : index
    %8 = vector.load %arg2[%7, %c0_1] : memref<8x128xf32, #tpu.memory_space<vmem>>, vector<8x128xf32>
    %c0_2 = arith.constant 0 : index
    %c0_3 = arith.constant 0 : index
    %9 = vector.load %arg1[%c0_2, %c0_3] : memref<8x128xf32, #tpu.memory_space<vmem>>, vector<8x128xf32>
    %c0_4 = arith.constant 0 : index
    %c0_5 = arith.constant 0 : index
    %10 = vector.load %arg2[%c0_4, %c0_5] : memref<8x128xf32, #tpu.memory_space<vmem>>, vector<8x128xf32>
    %cst = arith.constant dense<0.000000e+00> : vector<8x8xf32>
    %11 = tpu.matmul %6, %10, %cst {dimension_numbers = #tpu.dot_dimension_numbers<[1], [1], [0], [0], [0, 0, 1, 0], [], []>} : vector<8x128xf32>, vector<8x128xf32>, vector<8x8xf32> -> vector<8x8xf32>
    %cst_6 = arith.constant 2.000000e+00 : f32
    %12 = vector.broadcast %cst_6 : f32 to vector<8x8xf32>
    %13 = arith.mulf %11, %12 : vector<8x8xf32>
    %cst_7 = arith.constant dense<0.000000e+00> : vector<8x8xf32>
    %14 = tpu.matmul %8, %10, %cst_7 {dimension_numbers = #tpu.dot_dimension_numbers<[1], [1], [0], [0], [0, 0, 1, 0], [], []>} : vector<8x128xf32>, vector<8x128xf32>, vector<8x8xf32> -> vector<8x8xf32>
    %cst_8 = arith.constant dense<0.000000e+00> : vector<8x8xf32>
    %15 = tpu.matmul %6, %9, %cst_8 {dimension_numbers = #tpu.dot_dimension_numbers<[1], [1], [0], [0], [0, 0, 1, 0], [], []>} : vector<8x128xf32>, vector<8x128xf32>, vector<8x8xf32> -> vector<8x8xf32>
    %16 = arith.addf %14, %15 : vector<8x8xf32>
    %cst_9 = arith.constant 2.500000e-01 : f32
    %17 = vector.broadcast %cst_9 : f32 to vector<8x8xf32>
    %18 = arith.mulf %16, %17 : vector<8x8xf32>
    %cst_10 = arith.constant dense<0xFF800000> : vector<8xf32>
    %19 = vector.multi_reduction <maximumf>, %18, %cst_10 [1] : vector<8x8xf32> to vector<8xf32>
    %20 = vector.shape_cast %19 : vector<8xf32> to vector<8x1xf32>
    %21 = vector.broadcast %20 : vector<8x1xf32> to vector<8x8xf32>
    %22 = arith.subf %18, %21 : vector<8x8xf32>
    %23 = math.exp %22 : vector<8x8xf32>
    %cst_11 = arith.constant dense<0.000000e+00> : vector<8xf32>
    %24 = vector.multi_reduction <add>, %23, %cst_11 [1] : vector<8x8xf32> to vector<8xf32>
    %25 = vector.shape_cast %24 : vector<8xf32> to vector<8x1xf32>
    %26 = vector.broadcast %25 : vector<8x1xf32> to vector<8x8xf32>
    %27 = arith.divf %23, %26 : vector<8x8xf32>
    %cst_12 = arith.constant dense<0xFF800000> : vector<8xf32>
    %28 = vector.multi_reduction <maximumf>, %13, %cst_12 [1] : vector<8x8xf32> to vector<8xf32>
    %29 = vector.shape_cast %28 : vector<8xf32> to vector<8x1xf32>
    %30 = vector.broadcast %29 : vector<8x1xf32> to vector<8x8xf32>
    %31 = arith.subf %13, %30 : vector<8x8xf32>
    %32 = math.exp %31 : vector<8x8xf32>
    %cst_13 = arith.constant dense<0.000000e+00> : vector<8xf32>
    %33 = vector.multi_reduction <add>, %32, %cst_13 [1] : vector<8x8xf32> to vector<8xf32>
    %34 = vector.shape_cast %33 : vector<8xf32> to vector<8x1xf32>
    %35 = math.log %34 : vector<8x1xf32>
    %36 = arith.addf %29, %35 : vector<8x1xf32>
    %c0_14 = arith.constant 0 : index
    %37 = memref.load %arg7[%c0_14] : memref<1xf32, #tpu.memory_space<smem>>
    %cst_15 = arith.constant 2.000000e+00 : f32
    %38 = vector.broadcast %cst_15 : f32 to vector<8x8xf32>
    %39 = arith.mulf %38, %13 : vector<8x8xf32>
    %40 = vector.broadcast %36 : vector<8x1xf32> to vector<8x8xf32>
    %41 = arith.subf %40, %39 : vector<8x8xf32>
    %42 = arith.mulf %27, %41 : vector<8x8xf32>
    %43 = vector.shape_cast %42 : vector<8x8xf32> to vector<1x8x8xf32>
    %cst_16 = arith.constant dense<0.000000e+00> : vector<1xf32>
    %44 = vector.multi_reduction <add>, %43, %cst_16 [1, 2] : vector<1x8x8xf32> to vector<1xf32>
    %45 = vector.shape_cast %44 : vector<1xf32> to vector<1x1x1xf32>
    %46 = vector.extract %45[0, 0, 0] : f32 from vector<1x1x1xf32>
    %47 = arith.addf %37, %46 : f32
    %c0_17 = arith.constant 0 : index
    %48 = memref.load %arg7[%c0_17] : memref<1xf32, #tpu.memory_space<smem>>
    memref.store %47, %arg7[%c0_17] : memref<1xf32, #tpu.memory_space<smem>>
    %c0_18 = arith.constant 0 : index
    %c0_19 = arith.constant 0 : index
    %49 = vector.load %arg6[%c0_18, %c0_19] : memref<1x8xf32, #tpu.memory_space<vmem>>, vector<1x8xf32>
    %cst_20 = arith.constant dense<0.000000e+00> : vector<8xf32>
    %50 = vector.multi_reduction <add>, %27, %cst_20 [0] : vector<8x8xf32> to vector<8xf32>
    %51 = vector.shape_cast %50 : vector<8xf32> to vector<1x8xf32>
    %52 = arith.addf %49, %51 : vector<1x8xf32>
    %c0_21 = arith.constant 0 : index
    %c0_22 = arith.constant 0 : index
    %53 = vector.load %arg6[%c0_21, %c0_22] : memref<1x8xf32, #tpu.memory_space<vmem>>, vector<1x8xf32>
    tpu.vector_store %arg6[%c0_21, %c0_22], %52 {strides = array<i32>} : memref<1x8xf32, #tpu.memory_space<vmem>>, vector<1x8xf32>,
    %cst_23 = arith.constant dense<0xFF800000> : vector<8xf32>
    %54 = vector.multi_reduction <maximumf>, %13, %cst_23 [0] : vector<8x8xf32> to vector<8xf32>
    %55 = vector.shape_cast %54 : vector<8xf32> to vector<1x8xf32>
    %c0_24 = arith.constant 0 : index
    %c0_25 = arith.constant 0 : index
    %56 = vector.load %arg4[%c0_24, %c0_25] : memref<1x8xf32, #tpu.memory_space<vmem>>, vector<1x8xf32>
    %57 = arith.maximumf %56, %55 : vector<1x8xf32>
    %c0_26 = arith.constant 0 : index
    %c0_27 = arith.constant 0 : index
    %58 = vector.load %arg5[%c0_26, %c0_27] : memref<1x8xf32, #tpu.memory_space<vmem>>, vector<1x8xf32>
    %c0_28 = arith.constant 0 : index
    %c0_29 = arith.constant 0 : index
    %59 = vector.load %arg4[%c0_28, %c0_29] : memref<1x8xf32, #tpu.memory_space<vmem>>, vector<1x8xf32>
    %60 = arith.subf %59, %57 : vector<1x8xf32>
    %61 = math.exp %60 : vector<1x8xf32>
    %62 = arith.mulf %58, %61 : vector<1x8xf32>
    %63 = vector.broadcast %57 : vector<1x8xf32> to vector<8x8xf32>
    %64 = arith.subf %13, %63 : vector<8x8xf32>
    %65 = math.exp %64 : vector<8x8xf32>
    %cst_30 = arith.constant dense<0.000000e+00> : vector<8xf32>
    %66 = vector.multi_reduction <add>, %65, %cst_30 [0] : vector<8x8xf32> to vector<8xf32>
    %67 = vector.shape_cast %66 : vector<8xf32> to vector<1x8xf32>
    %68 = arith.addf %62, %67 : vector<1x8xf32>
    %c0_31 = arith.constant 0 : index
    %c0_32 = arith.constant 0 : index
    %69 = vector.load %arg5[%c0_31, %c0_32] : memref<1x8xf32, #tpu.memory_space<vmem>>, vector<1x8xf32>
    tpu.vector_store %arg5[%c0_31, %c0_32], %68 {strides = array<i32>} : memref<1x8xf32, #tpu.memory_space<vmem>>, vector<1x8xf32>,
    %c0_33 = arith.constant 0 : index
    %c0_34 = arith.constant 0 : index
    %70 = vector.load %arg4[%c0_33, %c0_34] : memref<1x8xf32, #tpu.memory_space<vmem>>, vector<1x8xf32>
    tpu.vector_store %arg4[%c0_33, %c0_34], %57 {strides = array<i32>} : memref<1x8xf32, #tpu.memory_space<vmem>>, vector<1x8xf32>,
    %c0_i32_35 = arith.constant 0 : i32
    %71 = arith.cmpi eq, %arg0, %c0_i32_35 : i32
    %72 = arith.extui %71 : i1 to i32
    %c0_i32_36 = arith.constant 0 : i32
    %73 = arith.cmpi ne, %72, %c0_i32_36 : i32
    scf.if %73 {
      %c0_37 = arith.constant 0 : index
      %c0_38 = arith.constant 0 : index
      %74 = vector.load %arg4[%c0_37, %c0_38] : memref<1x8xf32, #tpu.memory_space<vmem>>, vector<1x8xf32>
      %c0_39 = arith.constant 0 : index
      %c0_40 = arith.constant 0 : index
      %75 = vector.load %arg5[%c0_39, %c0_40] : memref<1x8xf32, #tpu.memory_space<vmem>>, vector<1x8xf32>
      %76 = math.log %75 : vector<1x8xf32>
      %77 = arith.addf %74, %76 : vector<1x8xf32>
      %c0_41 = arith.constant 0 : index
      %78 = memref.load %arg7[%c0_41] : memref<1xf32, #tpu.memory_space<smem>>
      %c0_42 = arith.constant 0 : index
      %c0_43 = arith.constant 0 : index
      %79 = vector.load %arg6[%c0_42, %c0_43] : memref<1x8xf32, #tpu.memory_space<vmem>>, vector<1x8xf32>
      %80 = arith.mulf %77, %79 : vector<1x8xf32>
      %81 = vector.shape_cast %80 : vector<1x8xf32> to vector<1x1x8xf32>
      %cst_44 = arith.constant dense<0.000000e+00> : vector<1xf32>
      %82 = vector.multi_reduction <add>, %81, %cst_44 [1, 2] : vector<1x1x8xf32> to vector<1xf32>
      %83 = vector.shape_cast %82 : vector<1xf32> to vector<1x1x1xf32>
      %84 = vector.extract %83[0, 0, 0] : f32 from vector<1x1x1xf32>
      %85 = arith.addf %78, %84 : f32
      %cst_45 = arith.constant 6.250000e-02 : f32
      %86 = arith.mulf %85, %cst_45 : f32
      %c0_46 = arith.constant 0 : index
      %c0_47 = arith.constant 0 : index
      %87 = memref.load %arg3[%c0_46, %c0_47] : memref<1x1xf32, #tpu.memory_space<smem>>
      memref.store %86, %arg3[%c0_46, %c0_47] : memref<1x1xf32, #tpu.memory_space<smem>>
    } else {
    }
    return
  }
  func.func @transform_0(%arg0: i32) -> (i32, i32) {
    %c0_i32 = arith.constant 0 : i32
    %c0_i32_0 = arith.constant 0 : i32
    %c0_i32_1 = arith.constant 0 : i32
    return %c0_i32, %c0_i32_0 : i32, i32
  }
  func.func @transform_1(%arg0: i32) -> (i32, i32) {
    %c0_i32 = arith.constant 0 : i32
    %c0_i32_0 = arith.constant 0 : i32
    %c0_i32_1 = arith.constant 0 : i32
    return %c0_i32, %c0_i32_0 : i32, i32
  }
  func.func @transform_2(%arg0: i32) -> (i32, i32) {
    %c0_i32 = arith.constant 0 : i32
    %c0_i32_0 = arith.constant 0 : i32
    %c0_i32_1 = arith.constant 0 : i32
    return %c0_i32, %c0_i32_0 : i32, i32
  }
}

</mosaic_0001>

<bundles_post_ra>
// kernel: tpu_custom_call.1
= control target key start
LH: loop header
LB: loop body
LE: loop exit
PB: predicated region body
PF: predicated region fallthrough
CT: control target
= control target key end

     0   :  { %7 = vsyncpa [#allocation7], 0  ;;  %s573_s0 = inlined_call_operand.hbm [shape: f32[8,128], index: 0, kind: input, shape index: {}]   ;;  %s574_s1 = inlined_call_operand.hbm [shape: f32[8,128], index: 1, kind: input, shape index: {}]   ;;  %s575_s2 = inlined_call_operand.hbm [shape: f32[1,1], index: 2, kind: output, shape index: {}]  }
   0x1   :  { %8 = vsyncpa [#allocation10], 0 }
   0x2   :  { %9 = vsyncpa [#allocation8], 0  ;;  %s496_s9 = smov [#allocation6]   ;;  %s497_s11 = smov [#allocation9]  }
   0x3   :  { %s16_s10 = sshll.u32 %s496_s9, 4  ;;  %s26_s12 = sshll.u32 %s497_s11, 4  ;;  %s17_s10 = int_to_ptr.vmem [resolvable:$true] %s16_s10  ;;  %s27_s12 = int_to_ptr.vmem [resolvable:$true] %s26_s12 }
   0x4   :  { %s436_s15 = scalar_lea.hbm %s573_s0, 128 }
   0x5   :  { %p437_p0 = scmp.ne.s32.totalorder %s573_s0, %s436_s15  ;;  %p440_p1 = scmp.lt.u32.totalorder %s436_s15, %s573_s0 }
   0x7   :  { %p442_p2 = pnand %p440_p1, %p437_p0 }
   0x9   :  { %445 = shalt.err (!%p442_p2)
}
   0xa   :  { %s446_s20 = scalar_lea.vmem %s17_s10, 128  ;;  %p451_p4 = scmp.lt.s32.totalorder %s17_s10, %s17_s10 }
   0xb   :  { %p447_p3 = scmp.ne.s32.totalorder %s17_s10, %s446_s20  ;;  %p452_p5 = scmp.lt.s32.totalorder %s446_s20, %s446_s20 }
   0xd   :  { %p453_p6 = por %p452_p5, %p451_p4 }
   0xf   :  { %p454_p7 = pnand %p453_p6, %p447_p3 }
  0x11   :  { %457 = shalt.err (!%p454_p7)
}
  0x12   :  { %19 = dma.hbm_to_vmem [thread:$0]  %s573_s0, 128, %s17_s10, [#allocation7]  }
  0x13   :  { %s458_s25 = scalar_lea.hbm %s574_s1, 128 }
  0x14   :  { %p459_p8 = scmp.ne.s32.totalorder %s574_s1, %s458_s25  ;;  %p462_p9 = scmp.lt.u32.totalorder %s458_s25, %s574_s1 }
  0x16   :  { %p464_p10 = pnand %p462_p9, %p459_p8 }
  0x18   :  { %467 = shalt.err (!%p464_p10)
}
  0x19   :  { %s468_s30 = scalar_lea.vmem %s27_s12, 128  ;;  %p473_p12 = scmp.lt.s32.totalorder %s27_s12, %s27_s12 }
  0x1a   :  { %p469_p11 = scmp.ne.s32.totalorder %s27_s12, %s468_s30  ;;  %p474_p13 = scmp.lt.s32.totalorder %s468_s30, %s468_s30 }
  0x1c   :  { %p475_p0 = por %p474_p13, %p473_p12 }
  0x1e   :  { %p476_p1 = pnand %p475_p0, %p469_p11 }
  0x20   :  { %479 = shalt.err (!%p476_p1)
}
  0x21   :  { %29 = dma.hbm_to_vmem [thread:$0]  %s574_s1, 128, %s27_s12, [#allocation10]  }
  0x22   :  { %490 = dma.done.wait [#allocation7], 128  }
  0x23   :  { %491 = vsyncadd [#allocation7], 4294967168 }
  0x24   :  { %492 = dma.done.wait [#allocation10], 128  }
  0x25   :  { %493 = vsyncadd [#allocation10], 4294967168  ;;  %v498_v0 = vmov 0.0   ;;  %vm499_vm0 = vmmov 0   ;;  %v52_v1 = vld [vmem:[#allocation9] sm:$0xff]  ;;  %v51_v2 = vld [vmem:[#allocation6] sm:$0xff]  ;;  %v331_v9 = vlaneseq }
  0x26   :  { %395 = vmatprep.subr.mxu0 %v498_v0  ;;  %400 = vmatprep.subr.mxu1 %v498_v0  ;;  %vm40_vm1 = vcmask 57344   ;;  %v500_v3 = vmov -1e+30   ;;  %vm265_vm2 = vcmask 64512   ;;  %s480_s9 = scalar_lea.hbm %s575_s2, 16 }
  0x27   :  { %397 = vmatprep.mubr.msk.f32.mxu0 %vm499_vm0, %v498_v0  ;;  %402 = vmatprep.mubr.msk.f32.mxu1 %vm499_vm0, %v498_v0  ;;  %41 = vst.msk [vmem:[#allocation2] sm:$0x1] %vm40_vm1, %v500_v3  ;;  %42 = vst.msk [vmem:[#allocation3] sm:$0x1] %vm40_vm1, %v498_v0  ;;  %v332_v15 = vshrl.u32 %v331_v9, 7  ;;  %p481_p2 = scmp.ne.s32.totalorder %s575_s2, %s480_s9  ;;  %p484_p3 = scmp.lt.u32.totalorder %s480_s9, %s575_s2 }
  0x28   :  { %396 = vmatpush3.xpose.msra.mxu0 %v52_v1  ;;  %401 = vmatpush3.xpose.msra.mxu1 %v51_v2  ;;  %43 = vst.msk [vmem:[#allocation4] sm:$0x1] %vm40_vm1, %v498_v0 }
  0x29   :  { %405 = vmatprep.subr.mxu1 %v498_v0  ;;  %v333_v20 = vsub.s32 0, %v332_v15  ;;  %p486_p4 = pnand %p484_p3, %p481_p2 }
  0x2b   :  { %398 = vmatmul.mubr.f32.vlgmr.msra.gmra.mrb[0].mxu0 %v51_v2  ;;  %403 = vmatmul.mubr.f32.vlgmr.msra.gmra.mrb[0].mxu1 %v51_v2 }
  0x2c   :  { %406 = vmatpush3.xpose.msra.mxu1 %v52_v1  ;;  %407 = vmatprep.mubr.msk.f32.mxu1 %vm499_vm0, %v498_v0 }
  0x2e   :  { %v323_v19 = vld [vmem:[#allocation2] sm:$0x1]  ;;  %v325_v34 = vld [vmem:[#allocation3] sm:$0x1] }
  0x33   :  { %408 = vmatmul.mubr.f32.vlgmr.msra.gmra.mrb[0].mxu1 %v52_v1 }
  0xfe   :  { %v119_v4 = vpop.f32.mrb[0].mxu0 }
  0xff   :  { %v544_v5 = vmul.f32 2.0, %v119_v4  ;;  %v399_v6 = vpop.f32.mrb[1].mxu0  ;;  %v306_v4 = vld [vmem:[#allocation4] sm:$0x1] }
 0x101   :  { %v277_v7 = vsel %vm265_vm2, %v544_v5, -inf  ;;  %v290_v61 = vmul.f32 2.0, %v544_v5 }
 0x102   :  { %v317_v8 = vrot.slane %v277_v7, 4 }
 0x104   :  { %v318_v10 = vmax.f32 %v277_v7, %v317_v8 }
 0x106   :  { %v260_v11 = vpop.f32.mrb[0].mxu1  ;;  %v319_v12 = vrot.slane %v318_v10, 2 }
 0x107   :  { %v264_v13 = vmul.f32 0.25, %v260_v11  ;;  %v409_v14 = vpop.f32.mrb[1].mxu1 }
 0x108   :  { %v320_v16 = vmax.f32 %v318_v10, %v319_v12 }
 0x109   :  { %v266_v17 = vsel %vm265_vm2, %v264_v13, -inf }
 0x10a   :  { %267 = vmax.xlane.f32.xlu0 %v266_v17  ;;  %v321_v18 = vrot.slane %v320_v16, 1 }
 0x10c   :  { %v322_v21 = vmax.f32 %v320_v16, %v321_v18 }
 0x10e   :  { %278 = vmax.xlane.f32.xlu0 %v277_v7  ;;  %v324_v22 = vmax.f32 %v323_v19, %v322_v21 }
 0x110   :  { %v334_v23 = vrot.slane %v324_v22, %v333_v20  ;;  %348 = vst.msk [vmem:[#allocation2] sm:$0x1] %vm40_vm1, %v324_v22  ;;  %v326_v26 = vsub.f32 %v323_v19, %v324_v22 }
 0x112   :  { %v336_v24 = vsub.f32 %v544_v5, %v334_v23  ;;  %v327_v27 = vmul.f32 1.442695, %v326_v26 }
 0x114   :  { %v337_v25 = vmul.f32 1.442695, %v336_v24 }
 0x116   :  { %422 = vpow2.f32 %v337_v25 }
 0x117   :  { %424 = vpow2.f32 %v327_v27  ;;  %v352_v10 = vld [vmem:[#allocation2] sm:$0x1] }
 0x120   :  { %v423_v28 = vpop.eup %422 }
 0x121   :  { %v339_v29 = vsel %vm265_vm2, %v423_v28, 0.0  ;;  %v425_v33 = vpop.eup %424 }
 0x122   :  { %v340_v30 = vrot.slane %v339_v29, 4  ;;  %v329_v36 = vmul.f32 %v425_v33, %v325_v34 }
 0x124   :  { %v341_v31 = vadd.f32 %v340_v30, %v339_v29 }
 0x126   :  { %v342_v32 = vrot.slane %v341_v31, 2 }
 0x128   :  { %v343_v35 = vadd.f32 %v342_v32, %v341_v31 }
 0x12a   :  { %v344_v37 = vrot.slane %v343_v35, 1 }
 0x12c   :  { %v345_v38 = vadd.f32 %v344_v37, %v343_v35 }
 0x12e   :  { %v346_v39 = vadd.f32 %v345_v38, %v329_v36 }
 0x130   :  { %347 = vst.msk [vmem:[#allocation3] sm:$0x1] %vm40_vm1, %v346_v39 }
 0x137   :  { %v353_v57 = vld [vmem:[#allocation3] sm:$0x1] }
 0x197   :  { %v268_v40 = vpop.xlane.xlu0 %267 }
 0x198   :  { %v269_v41 = vsub.f32 %v264_v13, %v268_v40 }
 0x19a   :  { %v270_v42 = vmul.f32 1.442695, %v269_v41 }
 0x19b   :  { %v279_v43 = vpop.xlane.xlu0 %278 }
 0x19c   :  { %426 = vpow2.f32 %v270_v42  ;;  %v280_v44 = vsub.f32 %v544_v5, %v279_v43 }
 0x19e   :  { %v281_v45 = vmul.f32 1.442695, %v280_v44 }
 0x1a0   :  { %428 = vpow2.f32 %v281_v45 }
 0x1a6   :  { %v427_v46 = vpop.eup %426 }
 0x1a7   :  { %v272_v47 = vsel %vm265_vm2, %v427_v46, 0.0 }
 0x1a8   :  { %273 = vadd.xlane.f32.xlu1 %v272_v47 }
 0x1aa   :  { %v429_v48 = vpop.eup %428 }
 0x1ab   :  { %v283_v49 = vsel %vm265_vm2, %v429_v48, 0.0 }
 0x1ac   :  { %284 = vadd.xlane.f32.xlu1 %v283_v49 }
 0x235   :  { %v274_v50 = vpop.xlane.xlu1 %273 }
 0x236   :  { %430 = vrcp.f32 %v274_v50 }
 0x239   :  { %v285_v51 = vpop.xlane.xlu1 %284 }
 0x23a   :  { %432 = vlog2.f32 %v285_v51 }
 0x23b   :  { %434 = vlog2.f32 %v353_v57 }
 0x240   :  { %v431_v52 = vpop.eup %430 }
 0x241   :  { %v276_v53 = vmul.f32 %v431_v52, %v427_v46 }
 0x243   :  { %v307_v54 = vsel %vm265_vm2, %v276_v53, 0.0 }
 0x244   :  { %v433_v55 = vpop.eup %432  ;;  %v308_v56 = vrot.slane %v307_v54, 4 }
 0x245   :  { %v287_v58 = vmul.f32 0.6931472, %v433_v55  ;;  %v435_v8 = vpop.eup %434 }
 0x246   :  { %v309_v59 = vadd.f32 %v308_v56, %v307_v54  ;;  %v355_v9 = vmul.f32 0.6931472, %v435_v8 }
 0x247   :  { %v288_v60 = vadd.f32 %v287_v58, %v279_v43 }
 0x248   :  { %v310_v62 = vrot.slane %v309_v59, 2  ;;  %v356_v11 = vadd.f32 %v355_v9, %v352_v10 }
 0x249   :  { %v291_v63 = vsub.f32 %v288_v60, %v290_v61 }
 0x24a   :  { %v311_v0 = vadd.f32 %v310_v62, %v309_v59 }
 0x24b   :  { %v292_v1 = vmul.f32 %v291_v63, %v276_v53 }
 0x24c   :  { %v312_v2 = vrot.slane %v311_v0, 1 }
 0x24d   :  { %v293_v3 = vsel %vm265_vm2, %v292_v1, 0.0 }
 0x24e   :  { %v313_v6 = vadd.f32 %v312_v2, %v311_v0  ;;  %294 = vadd.xlane.f32.xlu0 %v293_v3 }
 0x250   :  { %v314_v7 = vadd.f32 %v313_v6, %v306_v4 }
 0x252   :  { %316 = vst.msk [vmem:[#allocation4] sm:$0x1] %vm40_vm1, %v314_v7 }
 0x259   :  { %v358_v12 = vld [vmem:[#allocation4] sm:$0x1] }
 0x25a   :  { %v359_v5 = vmul.f32 %v358_v12, %v356_v11 }
 0x25c   :  { %v360_v13 = vsel %vm40_vm1, %v359_v5, 0.0 }
 0x25d   :  { %361 = vadd.xlane.f32.xlu1 %v360_v13 }
 0x2db   :  { %v295_v14 = vpop.xlane.xlu0 %294 }
 0x2dc   :  { %v296_v15 = vrot.slane %v295_v14, 4 }
 0x2de   :  { %v297_v16 = vadd.f32 %v296_v15, %v295_v14 }
 0x2e0   :  { %v298_v17 = vrot.slane %v297_v16, 2 }
 0x2e2   :  { %v299_v18 = vadd.f32 %v298_v17, %v297_v16 }
 0x2e4   :  { %v300_v19 = vrot.slane %v299_v18, 1 }
 0x2e6   :  { %v301_v20 = vadd.f32 %v300_v19, %v299_v18 }
 0x2e8   :  { %412 = vpush %v301_v20 }
 0x2ea   :  { %v362_v21 = vpop.xlane.xlu1 %361 }
 0x2eb   :  { %v363_v22 = vrot.slane %v362_v21, 4 }
 0x2ed   :  { %v364_v23 = vadd.f32 %v363_v22, %v362_v21 }
 0x2ef   :  { %v365_v24 = vrot.slane %v364_v23, 2 }
 0x2f1   :  { %v366_v25 = vadd.f32 %v365_v24, %v364_v23 }
 0x2f3   :  { %v367_v26 = vrot.slane %v366_v25, 1 }
 0x2f5   :  { %v368_v27 = vadd.f32 %v367_v26, %v366_v25 }
 0x2f7   :  { %414 = vpush %v368_v27 }
 0x319   :  { %s413_s1 = spop %412 }
 0x328   :  { %s415_s4 = spop %414 }
 0x329   :  { %s370_s5 = sadd.f32 %s415_s4, %s413_s1 }
 0x32b   :  { %s371_s6 = smul.f32 0.0625, %s370_s5 }
 0x32d   :  { %373 = sst [smem:[#allocation11]] %s371_s6 }
 0x32e   :  { %489 = shalt.err (!%p486_p4)
}
 0x32f   :  { %s501_s14 = smov [#allocation11]  }
 0x330   :  { %381 = dma.smem_to_hbm %s501_s14, 16, %s575_s2, [#allocation8]  }
 0x331   :  { %494 = dma.done.wait [#allocation8], 16  }
 0x332   :  { %495 = vsyncadd [#allocation8], 4294967280 }
 0x333   :  { %385 = sfence }
 0x334   :  { %386 = vsyncpa [#allocation7], 1 }
 0x335   :  { %387 = vsyncpa [#allocation10], 1 }
 0x336   :  { %388 = vsyncpa [#allocation8], 1 }

</bundles_post_ra>
